<compile_context>
chip_gen: v5e
topology: v5e:2x2
jax: 0.10.0
libtpu: 0.0.40
codegen_flags: <defaults>
</compile_context>

<pallas_src>
from functools import partial

import jax
import jax.numpy as jnp
from jax.experimental import pallas as pl
from jax.experimental.pallas import tpu as pltpu

HIDDEN = 20
P_ROWS = 24          # slab rows, padded to a multiple of 8 sublanes
P_COLS = 128         # slab lanes (one vreg-width)
MAX_TM = 512         # cap: (20, 512) f32 activation ~= 24 live vregs, no spills


def _memory_mlp_kernel(x_ref, p_ref, out_ref):
    """x_ref: (1, TM) samples-on-lanes.  p_ref: (24, 128) packed params.
    out_ref: (2, TM) -- both duplicate output rows, lane-dense."""
    H = HIDDEN
    x = x_ref[...]                                   # (1, TM)

    # Static slices of the packed slab (zero-cost ref views).
    w2 = p_ref[0:H, 0:H]                             # (H, H)
    w3 = p_ref[0:H, H:2 * H]                         # (H, H)
    w1 = p_ref[0:H, 2 * H:2 * H + 1]                 # (H, 1)
    b1 = p_ref[0:H, 2 * H + 1:2 * H + 2]             # (H, 1)
    b2 = p_ref[0:H, 2 * H + 2:2 * H + 3]             # (H, 1)
    b3 = p_ref[0:H, 2 * H + 3:2 * H + 4]             # (H, 1)
    w4 = p_ref[H:H + 1, 0:H]                         # (1, H)
    b4 = p_ref[H + 1:H + 2, 0:1]                     # (1, 1)

    hp = jax.lax.Precision.HIGHEST

    # Layer 1: Linear(1, H) -> broadcast outer product, lane-dense (H, TM).
    h = jnp.tanh(w1 * x + b1)                        # (H, TM)

    # Layers 2 / 3: (H, H) @ (H, TM) on the MXU with f32 accumulation.
    h = jnp.tanh(jnp.dot(w2, h, preferred_element_type=jnp.float32,
                         precision=hp) + b2)
    h = jnp.tanh(jnp.dot(w3, h, preferred_element_type=jnp.float32,
                         precision=hp) + b3)

    # Layer 4: Linear(H, 1) -> (1, TM); duplicate to both output rows.
    y = jnp.dot(w4, h, preferred_element_type=jnp.float32, precision=hp) + b4
    out_ref[...] = jnp.broadcast_to(y, (2, y.shape[1]))


def _choose_tile(n_rows, max_tm=MAX_TM):
    """Single largest lane-dense tile (multiple of 128) covering the input,
    capped at max_tm.  No forced multi-step split at small N."""
    tm = 128 * pl.cdiv(n_rows, 128)
    return min(max_tm, tm)


def pack_params(params):
    """Pack the 8 weight/bias tensors into one (24, 128) f32 slab (host-side,
    once).  Layout:
      rows 0:20, cols  0:20 -> w2        rows 0:20, col 40 -> w1[:,0]
      rows 0:20, cols 20:40 -> w3        rows 0:20, col 41 -> b1[:,0]
      row  20,   cols  0:20 -> w4[0,:]   rows 0:20, col 42 -> b2[:,0]
      row  21,   col   0    -> b4        rows 0:20, col 43 -> b3[:,0]
    """
    w1, b1, w2, b2, w3, b3, w4, b4 = params
    H = HIDDEN
    slab = jnp.zeros((P_ROWS, P_COLS), jnp.float32)
    slab = slab.at[:H, :H].set(w2.astype(jnp.float32))
    slab = slab.at[:H, H:2 * H].set(w3.astype(jnp.float32))
    slab = slab.at[:H, 2 * H].set(w1[:, 0].astype(jnp.float32))
    slab = slab.at[:H, 2 * H + 1].set(b1[:, 0].astype(jnp.float32))
    slab = slab.at[:H, 2 * H + 2].set(b2[:, 0].astype(jnp.float32))
    slab = slab.at[:H, 2 * H + 3].set(b3[:, 0].astype(jnp.float32))
    slab = slab.at[H, :H].set(w4[0, :].astype(jnp.float32))
    slab = slab.at[H + 1, 0].set(b4[0, 0].astype(jnp.float32))
    return slab


@jax.jit
def memory_forward(t, packed):
    """Pallas equivalent of Memory.forward(t).  t: (N,) f32 -> (2N, 1) f32.
    `packed` is the (24, 128) slab from pack_params."""
    t = t.astype(jnp.float32)
    N = t.shape[0]

    tm = _choose_tile(N)
    m_pad = pl.cdiv(N, tm) * tm
    x_pad = jnp.pad(t, (0, m_pad - N)).reshape(1, m_pad)        # (1, M_pad)

    y = pl.pallas_call(
        _memory_mlp_kernel,
        out_shape=jax.ShapeDtypeStruct((2, m_pad), jnp.float32),
        grid_spec=pltpu.PrefetchScalarGridSpec(
            num_scalar_prefetch=0,
            grid=(m_pad // tm,),
            in_specs=[
                pl.BlockSpec((1, tm), lambda i: (0, i)),          # lane-dense x
                pl.BlockSpec((P_ROWS, P_COLS), lambda i: (0, 0)), # packed params
            ],
            out_specs=pl.BlockSpec((2, tm), lambda i: (0, i)),    # lane-dense out
        ),
        compiler_params=pltpu.CompilerParams(
            dimension_semantics=("parallel",)),
    )(x_pad, packed)                                              # (2, M_pad)

    # Kernel computed f(t[i]) (unflipped).  Reverse on the output side, then
    # transpose/reshape to reproduce flip -> reshape(-1,1) -> repeat(1,2)
    # -> reshape(-1,1).  All of this fuses under jit.
    y = y[:, :N][:, ::-1]                                         # (2, N)
    return y.T.reshape(-1, 1)                                     # (2N, 1)


def init_params(key):
    """Deterministic synthetic parameters in PyTorch (out, in) orientation;
    biases stored as (out, 1) columns."""
    ks = jax.random.split(key, 8)
    scale = 0.5
    w1 = scale * jax.random.normal(ks[0], (HIDDEN, 1), jnp.float32)       # Linear(1, 20).weight
    b1 = scale * jax.random.normal(ks[1], (HIDDEN, 1), jnp.float32)
    w2 = scale * jax.random.normal(ks[2], (HIDDEN, HIDDEN), jnp.float32)  # Linear(20, 20).weight
    b2 = scale * jax.random.normal(ks[3], (HIDDEN, 1), jnp.float32)
    w3 = scale * jax.random.normal(ks[4], (HIDDEN, HIDDEN), jnp.float32)
    b3 = scale * jax.random.normal(ks[5], (HIDDEN, 1), jnp.float32)
    w4 = scale * jax.random.normal(ks[6], (1, HIDDEN), jnp.float32)       # Linear(20, 1).weight
    b4 = scale * jax.random.normal(ks[7], (1, 1), jnp.float32)
    return (w1, b1, w2, b2, w3, b3, w4, b4)


def memory_forward_ref(t, params):
    """Pure-JAX reference of the original torch forward (for correctness)."""
    w1, b1, w2, b2, w3, b3, w4, b4 = params
    x = jnp.flip(t, axis=0).reshape(-1, 1)
    x = jnp.tile(x, (1, 2)).reshape(-1, 1).astype(jnp.float32)
    h = jnp.tanh(x @ w1.T + b1.T)
    h = jnp.tanh(h @ w2.T + b2.T)
    h = jnp.tanh(h @ w3.T + b3.T)
    return h @ w4.T + b4.T


if __name__ == "__main__":
    key = jax.random.PRNGKey(0)
    k_params, _ = jax.random.split(key)

    params = init_params(k_params)
    packed = pack_params(params)          # host-side, once

    # Same size as the original module's usage: t = linspace(0, 80, 200).
    N = 200
    t_vec = jnp.linspace(0.0, 80.0, N, dtype=jnp.float32)

    out = memory_forward(t_vec, packed)
    out = jax.block_until_ready(out)

    ref = memory_forward_ref(t_vec, params)
    assert out.shape == (2 * N, 1), out.shape
    assert jnp.allclose(out, ref, atol=1e-4, rtol=1e-4), "mismatch vs reference"

    print("KERNEL_OK")
</pallas_src>

<mosaic_0001>
module attributes {stable_mosaic.version = 11 : i64} {
  func.func @_memory_mlp_kernel(%arg0: i32, %arg1: memref<1x256xf32, #tpu.memory_space<vmem>>, %arg2: memref<24x128xf32, #tpu.memory_space<vmem>>, %arg3: memref<2x256xf32, #tpu.memory_space<vmem>>) attributes {dimension_semantics = [#tpu.dimension_semantics<parallel>], iteration_bounds = array<i64: 1>, scalar_prefetch = 0 : i64, scratch_operands = 0 : i64, tpu.core_type = #tpu.core_type<tc>, window_params = [{transform_indices = @transform_0, window_bounds = array<i64: 1, 256>}, {pipeline_mode = #tpu.pipeline_mode<synchronous>, transform_indices = @transform_1, window_bounds = array<i64: 24, 128>}, {transform_indices = @transform_2, window_bounds = array<i64: 2, 256>}]} {
    %c0 = arith.constant 0 : index
    %c0_0 = arith.constant 0 : index
    %0 = vector.load %arg1[%c0, %c0_0] : memref<1x256xf32, #tpu.memory_space<vmem>>, vector<1x256xf32>
    %c0_1 = arith.constant 0 : index
    %c0_2 = arith.constant 0 : index
    %1 = vector.load %arg2[%c0_1, %c0_2] : memref<24x128xf32, #tpu.memory_space<vmem>>, vector<20x20xf32>
    %c0_3 = arith.constant 0 : index
    %c20 = arith.constant 20 : index
    %2 = vector.load %arg2[%c0_3, %c20] : memref<24x128xf32, #tpu.memory_space<vmem>>, vector<20x20xf32>
    %c0_4 = arith.constant 0 : index
    %c40 = arith.constant 40 : index
    %3 = vector.load %arg2[%c0_4, %c40] : memref<24x128xf32, #tpu.memory_space<vmem>>, vector<20x1xf32>
    %c0_5 = arith.constant 0 : index
    %c41 = arith.constant 41 : index
    %4 = vector.load %arg2[%c0_5, %c41] : memref<24x128xf32, #tpu.memory_space<vmem>>, vector<20x1xf32>
    %c0_6 = arith.constant 0 : index
    %c42 = arith.constant 42 : index
    %5 = vector.load %arg2[%c0_6, %c42] : memref<24x128xf32, #tpu.memory_space<vmem>>, vector<20x1xf32>
    %c0_7 = arith.constant 0 : index
    %c43 = arith.constant 43 : index
    %6 = vector.load %arg2[%c0_7, %c43] : memref<24x128xf32, #tpu.memory_space<vmem>>, vector<20x1xf32>
    %c20_8 = arith.constant 20 : index
    %c0_9 = arith.constant 0 : index
    %7 = vector.load %arg2[%c20_8, %c0_9] : memref<24x128xf32, #tpu.memory_space<vmem>>, vector<1x20xf32>
    %c21 = arith.constant 21 : index
    %c0_10 = arith.constant 0 : index
    %8 = vector.load %arg2[%c21, %c0_10] : memref<24x128xf32, #tpu.memory_space<vmem>>, vector<1x1xf32>
    %9 = vector.broadcast %3 : vector<20x1xf32> to vector<20x256xf32>
    %10 = vector.broadcast %0 : vector<1x256xf32> to vector<20x256xf32>
    %11 = arith.mulf %9, %10 : vector<20x256xf32>
    %12 = vector.broadcast %4 : vector<20x1xf32> to vector<20x256xf32>
    %13 = arith.addf %11, %12 : vector<20x256xf32>
    %14 = math.tanh %13 : vector<20x256xf32>
    %cst = arith.constant dense<0.000000e+00> : vector<20x256xf32>
    %15 = tpu.matmul %1, %14, %cst {dimension_numbers = #tpu.dot_dimension_numbers<[1], [0], [0], [1], [0, 0, 1, 1], [], []>, precision = #tpu.contract_precision<fp32>} : vector<20x20xf32>, vector<20x256xf32>, vector<20x256xf32> -> vector<20x256xf32>
    %16 = vector.broadcast %5 : vector<20x1xf32> to vector<20x256xf32>
    %17 = arith.addf %15, %16 : vector<20x256xf32>
    %18 = math.tanh %17 : vector<20x256xf32>
    %cst_11 = arith.constant dense<0.000000e+00> : vector<20x256xf32>
    %19 = tpu.matmul %2, %18, %cst_11 {dimension_numbers = #tpu.dot_dimension_numbers<[1], [0], [0], [1], [0, 0, 1, 1], [], []>, precision = #tpu.contract_precision<fp32>} : vector<20x20xf32>, vector<20x256xf32>, vector<20x256xf32> -> vector<20x256xf32>
    %20 = vector.broadcast %6 : vector<20x1xf32> to vector<20x256xf32>
    %21 = arith.addf %19, %20 : vector<20x256xf32>
    %22 = math.tanh %21 : vector<20x256xf32>
    %cst_12 = arith.constant dense<0.000000e+00> : vector<1x256xf32>
    %23 = tpu.matmul %7, %22, %cst_12 {dimension_numbers = #tpu.dot_dimension_numbers<[1], [0], [0], [1], [0, 0, 1, 1], [], []>, precision = #tpu.contract_precision<fp32>} : vector<1x20xf32>, vector<20x256xf32>, vector<1x256xf32> -> vector<1x256xf32>
    %24 = vector.broadcast %8 : vector<1x1xf32> to vector<1x256xf32>
    %25 = arith.addf %23, %24 : vector<1x256xf32>
    %26 = vector.shape_cast %25 : vector<1x256xf32> to vector<1x256xf32>
    %27 = vector.broadcast %26 : vector<1x256xf32> to vector<2x256xf32>
    %c0_13 = arith.constant 0 : index
    %c0_14 = arith.constant 0 : index
    %28 = vector.load %arg3[%c0_13, %c0_14] : memref<2x256xf32, #tpu.memory_space<vmem>>, vector<2x256xf32>
    tpu.vector_store %arg3[%c0_13, %c0_14], %27 {strides = array<i32>} : memref<2x256xf32, #tpu.memory_space<vmem>>, vector<2x256xf32>,
    return
  }
  func.func @transform_0(%arg0: i32) -> (i32, i32) {
    %c0_i32 = arith.constant 0 : i32
    %c0_i32_0 = arith.constant 0 : i32
    return %c0_i32, %arg0 : i32, i32
  }
  func.func @transform_1(%arg0: i32) -> (i32, i32) {
    %c0_i32 = arith.constant 0 : i32
    %c0_i32_0 = arith.constant 0 : i32
    %c0_i32_1 = arith.constant 0 : i32
    return %c0_i32, %c0_i32_0 : i32, i32
  }
  func.func @transform_2(%arg0: i32) -> (i32, i32) {
    %c0_i32 = arith.constant 0 : i32
    %c0_i32_0 = arith.constant 0 : i32
    return %c0_i32, %arg0 : i32, i32
  }
}

</mosaic_0001>

<bundles_post_ra>
// kernel: reverse
= control target key start
LH: loop header
LB: loop body
LE: loop exit
PB: predicated region body
PF: predicated region fallthrough
CT: control target
= control target key end

     0   :  { %v2_v0 = vlaneseq  ;;  %s315_s0 = inlined_call_operand.vmem [shape: f32[2,256], index: 0, kind: input, shape index: {}]   ;;  %s316_s1 = inlined_call_operand.vmem [shape: f32[2,256], index: 1, kind: output, shape index: {}]  }
   0x2   :  { %v3_v1 = vsub.s32 127, %v2_v0 }
   0x4   :  { %4 = vset.pattern.permute.xlu0 %v3_v1 }
   0x5   :  { %s275_s6 = smov 0   ;;  %s277_s7 = smov 0  }
   0x6   :  { %s279_s8 = smov 0  }
   0x7 LB: > { %s205_s9 = sadd.s32 4294967295, %s263_s8   ;;  %s19_s10 = sadd.s32 1, %s259_s7  ;;  %s263_s8 = sphi %s279_s8, %s10_s8   ;;  %s259_s7 = sphi %s277_s7, %s318_s7   ;;  %s255_s6 = sphi %s275_s6, %s317_s6  }
   0x8   : > { %p20_p0 = scmp.ge.s32.totalorder %s19_s10, 2  ;;  %p207_p1 = scmp.ge.s32.totalorder %s263_s8, 2 }
   0x9   : > { %s38_s11 = sand.u32 (!%p207_p1), 1, %s263_s8   ;;  %s41_s12 = ssub.s32 (!%p207_p1), 1, %s259_s7 }
   0xa   : > { %s320_s10 = smov (%p20_p0, %s19_s10), 0  ;;  %36 = sbr.rel (%p207_p1) target bundleno = 17 (0x11), region = 16 }
   0xb   : > { %s208_s13 = sshll.u32 (!%p207_p1), %s38_s11, 1  ;;  %s209_s14 = sshll.u32 (!%p207_p1), %s41_s12, 1 }
   0xc   : > { %s45_s17 = scalar_lea.vmem (!%p207_p1), %s315_s0, %s209_s14  ;;  %s40_s18 = scalar_lea.vmem (!%p207_p1), [#allocation1], %s208_s13 }
   0xf   : > { %v62_v2 = vld [vmem:[%s45_s17] sm:$0x3] }
  0x10   : > { %63 = vst [vmem:[%s40_s18] sm:$0x3] %v62_v2 }
  0x11 PF: > { %p210_p2 = scmp.ge.s32.totalorder %s263_s8, 1  ;;  %p80_p3 = scmp.lt.s32.totalorder %s263_s8, 3 }
  0x13   : > { %p81_p4 = pnand %p210_p2, %p80_p3 }
  0x14   : > { %s91_s19 = sand.u32 (!%p81_p4), 1, %s205_s9   ;;  %s214_s23 = sshll.u32 (!%p81_p4), %s255_s6, 1 }
  0x15   : > { %84 = sbr.rel (%p81_p4) target bundleno = 167 (0xa7), region = 50  ;;  %s211_s20 = sshll.u32 (!%p81_p4), %s91_s19, 1 }
  0x16   : > { %s93_s21 = scalar_lea.vmem (!%p81_p4), [#allocation1], %s211_s20  ;;  %s97_s22 = scalar_lea.vmem (!%p81_p4), [#allocation3], %s211_s20 }
  0x17   : > { %s120_s26 = scalar_lea.vmem (!%p81_p4), %s316_s1, %s214_s23 }
  0x1a   : > { %v100_v3 = vld [vmem:[%s93_s21] sm:$0x3] }
  0x1b   : > { %101 = vst [vmem:[#allocation0] sm:$0x3] %v100_v3 }
  0x22   : > { %v103_v4 = vld [vmem:[#allocation0] sm:$0xff] }
  0x23   : > { %104 = vperm.xlu0 %4, %v103_v4  }
  0x95   : > { %v105_v5 = vpop.permute.xlu0 %104 }
  0x96   : > { %106 = vst [vmem:[#allocation2] sm:$0xff] %v105_v5 }
  0x9d   : > { %v109_v6 = vld [vmem:[#allocation2] sm:$0x3] }
  0x9e   : > { %112 = vst [vmem:[%s97_s22] sm:$0x3] %v109_v6 }
  0xa5   : > { %v137_v7 = vld [vmem:[%s97_s22] sm:$0x3] }
  0xa6   : > { %138 = vst [vmem:[%s120_s26] sm:$0x3] %v137_v7 }
  0xa7 PF: > { %s10_s8 = sadd.s32 1, %s263_s8   ;;  %s317_s6 = smov %s259_s7 }
  0xa8   : > { %p7_p5 = scmp.ge.s32.totalorder %s10_s8, 4   ;;  %s318_s7 = smov %s320_s10 }
  0xaa   :  { %9 = sbr.rel (!%p7_p5) target bundleno = 7 (0x7), region = 110 }

// kernel: memory_forward.1
= control target key start
LH: loop header
LB: loop body
LE: loop exit
PB: predicated region body
PF: predicated region fallthrough
CT: control target
= control target key end

     0   :  { %7 = vsyncpa [#allocation3], 0  ;;  %s1542_s12 = smov [#allocation2]   ;;  %s1543_s14 = smov 128   ;;  %s1865_s0 = inlined_call_operand.vmem [shape: f32[1,256], index: 0, kind: input, shape index: {}]   ;;  %s1866_s1 = inlined_call_operand.hbm [shape: f32[24,128], index: 1, kind: input, shape index: {}]   ;;  %s1867_s2 = inlined_call_operand.vmem [shape: f32[2,256], index: 2, kind: output, shape index: {}]  }
   0x1   :  { %s14_s11 = sshll.u32 %s1866_s1, 4  ;;  %s16_s13 = sshll.u32 %s1542_s12, 4  ;;  %s15_s11 = int_to_ptr.hbm [resolvable:$true] %s14_s11  ;;  %s17_s13 = int_to_ptr.vmem [resolvable:$true] %s16_s13 }
   0x2   :  { %s1544_s15 = smov 8  }
   0x3   :  { %22 = dma.hbm_to_vmem [thread:$0]  %s15_s11, 384, %s17_s13, [#allocation3], %s1543_s14, %s1543_s14, %s1544_s15  }
   0x4   :  { %1540 = dma.done.wait [#allocation3], 384  }
   0x5   :  { %1541 = vsyncadd [#allocation3], 4294966912  ;;  %v1545_v0 = vmov 40   ;;  %v1546_v1 = vmov 41   ;;  %v1569_v2 = vld [vmem:[#allocation2 + $0x10] sm:$0xf] }
   0x6   :  { %1470 = vset.pattern.permute.xlu1 %v1545_v0  ;;  %1468 = vset.pattern.permute.xlu0 %v1545_v0  ;;  %v1571_v3 = vld [vmem:[#allocation2 + $0x8] sm:$0xff]  ;;  %v1576_v4 = vld [vmem:[#allocation2] sm:$0xff]  ;;  %vm95_vm0 = vcmask 162816   ;;  %v1547_v34 = vmov 42   ;;  %vm102_vm1 = vcmask 1043456   ;;  %vm1450_vm2 = vcmask 1041408  }
   0x7   :  { %1471 = vset.pattern.permute.xlu2 %v1546_v1  ;;  %45 = vperm.xlu0 %1468, %v1569_v2   ;;  %v27_v5 = vld [vmem:[%s1865_s0] sm:$0x3]  ;;  %v96_v15 = vsel %vm95_vm0, %v1576_v4, 0  ;;  %v98_v30 = vsel %vm95_vm0, %v1571_v3, 0  ;;  %v100_v49 = vsel %vm95_vm0, %v1569_v2, 0  ;;  %s1548_s0 = smov 108  }
   0x8   :  { %40 = vperm.xlu1 %1470, %v1571_v3   ;;  %64 = vperm.xlu2 %1471, %v1571_v3   ;;  %v49_v6 = vperm.slane %v27_v5, 0  ;;  %v50_v7 = vperm.slane %v27_v5, 1  ;;  %v1586_v16 = vand.u32 4294901760, %v96_v15  ;;  %v1598_v35 = vand.u32 4294901760, %v98_v30 }
   0x9   :  { %v1639_v59 = vand.u32 4294901760, %v100_v49 }
   0xa   :  { %v1589_v28 = vsub.f32 %v96_v15, %v1586_v16  ;;  %v1614_v45 = vsub.f32 %v98_v30, %v1598_v35 }
   0xc   :  { %v1596_v33 = vand.u32 4294901760, %v1589_v28  ;;  %v1637_v58 = vand.u32 4294901760, %v1614_v45 }
   0xe   :  { %v131_v41 = vsub.f32 %v1589_v28, %v1596_v33 }
   0xf   :  { %1469 = vset.pattern.permute.xlu0 %v1546_v1 }
  0x10   :  { %35 = vperm.xlu1 %1470, %v1576_v4   ;;  %68 = vperm.xlu0 %1469, %v1569_v2   ;;  %v1628_v53 = vand.u32 4294901760, %v131_v41 }
  0x11   :  { %60 = vperm.xlu2 %1471, %v1576_v4  }
  0x18   :  { %1474 = vset.pattern.permute.xlu0 %v1547_v34  ;;  %1472 = vset.pattern.permute.xlu1 %v1547_v34 }
  0x19   :  { %84 = vperm.xlu0 %1474, %v1576_v4   ;;  %92 = vperm.xlu1 %1472, %v1569_v2  }
  0x1a   :  { %1473 = vset.pattern.permute.xlu2 %v1547_v34 }
  0x1b   :  { %88 = vperm.xlu2 %1473, %v1571_v3  }
  0x21   :  { %595 = vrot.lane.b32.xlu1 %v1576_v4, %s1548_s0 }
  0x23   :  { %597 = vrot.lane.b32.xlu2 %v1571_v3, %s1548_s0 }
  0x29   :  { %599 = vrot.lane.b32.xlu1 %v1569_v2, %s1548_s0 }
  0x62   :  { %v65_v8 = vpop.permute.xlu2 %64 }
  0x6b   :  { %v61_v23 = vpop.permute.xlu2 %60 }
  0x79   :  { %v46_v9 = vpop.permute.xlu0 %45 }
  0x7a   :  { %v41_v10 = vpop.permute.xlu1 %40  ;;  %v57_v17 = vmul.f32 %v49_v6, %v46_v9  ;;  %v58_v19 = vmul.f32 %v50_v7, %v46_v9 }
  0x7b   :  { %v55_v11 = vmul.f32 %v49_v6, %v41_v10  ;;  %v56_v12 = vmul.f32 %v50_v7, %v41_v10 }
  0x7d   :  { %v73_v13 = vadd.f32 %v65_v8, %v55_v11  ;;  %v74_v14 = vadd.f32 %v65_v8, %v56_v12  ;;  %v1653_v8 = vsub.f32 %v100_v49, %v1639_v59 }
  0x7f   :  { %1480 = vtanh.f32 %v73_v13 }
  0x80   :  { %1482 = vtanh.f32 %v74_v14 }
  0x82   :  { %v36_v18 = vpop.permute.xlu1 %35  ;;  %v69_v22 = vpop.permute.xlu0 %68 }
  0x83   :  { %v53_v20 = vmul.f32 %v49_v6, %v36_v18  ;;  %v54_v21 = vmul.f32 %v50_v7, %v36_v18  ;;  %v75_v24 = vadd.f32 %v69_v22, %v57_v17  ;;  %v76_v27 = vadd.f32 %v69_v22, %v58_v19 }
  0x84   :  { %v139_v7 = vsub.f32 %v1614_v45, %v1637_v58  ;;  %v146_v19 = vand.u32 4294901760, %v1653_v8 }
  0x85   :  { %v71_v25 = vadd.f32 %v61_v23, %v53_v20  ;;  %v72_v26 = vadd.f32 %v61_v23, %v54_v21  ;;  %v1481_v29 = vpop.eup %1480  ;;  %1484 = vtanh.f32 %v75_v24 }
  0x86   :  { %v1483_v31 = vpop.eup %1482  ;;  %v1593_v32 = vand.u32 4294901760, %v1481_v29  ;;  %v140_v18 = vand.u32 4294901760, %v139_v7  ;;  %v147_v21 = vsub.f32 %v1653_v8, %v146_v19 }
  0x87   :  { %1486 = vtanh.f32 %v71_v25  ;;  %v1602_v36 = vand.u32 4294901760, %v1483_v31 }
  0x88   :  { %1488 = vtanh.f32 %v72_v26  ;;  %v173_v40 = vsub.f32 %v1481_v29, %v1593_v32  ;;  %v148_v22 = vand.u32 4294901760, %v147_v21 }
  0x89   :  { %1490 = vtanh.f32 %v76_v27  ;;  %v1617_v47 = vsub.f32 %v1483_v31, %v1602_v36  ;;  %v1706_v31 = vpop.permute.xlu2 %88 }
  0x8a   :  { %v174_v54 = vand.u32 4294901760, %v173_v40 }
  0x8b   :  { %v1485_v37 = vpop.eup %1484  ;;  %v408_v62 = vand.u32 4294901760, %v1617_v47  ;;  %v1709_v41 = vpop.permute.xlu1 %92 }
  0x8c   :  { %v104_v39 = vsel %vm102_vm1, %v1485_v37, 0  ;;  %v175_v1 = vsub.f32 %v173_v40, %v174_v54 }
  0x8d   :  { %v1487_v38 = vpop.eup %1486  ;;  %v1609_v43 = vand.u32 4294901760, %v104_v39  ;;  %v409_v10 = vsub.f32 %v1617_v47, %v408_v62 }
  0x8e   :  { %v1489_v42 = vpop.eup %1488  ;;  %v1611_v44 = vand.u32 4294901760, %v1487_v38  ;;  %v176_v13 = vand.u32 4294901760, %v175_v1 }
  0x8f   :  { %v1491_v46 = vpop.eup %1490  ;;  %v1619_v48 = vand.u32 4294901760, %v1489_v42  ;;  %123 = vmatpush.msra.mxu0 %v1609_v43  ;;  %249 = vmatpush.msra.mxu3 %v1609_v43  ;;  %v167_v50 = vsub.f32 %v104_v39, %v1609_v43  ;;  %v410_v15 = vand.u32 4294901760, %v409_v10 }
  0x90   :  { %v179_v51 = vsub.f32 %v1487_v38, %v1611_v44  ;;  %v107_v52 = vsel %vm102_vm1, %v1491_v46, 0 }
  0x91   :  { %v1630_v55 = vand.u32 4294901760, %v107_v52  ;;  %v1633_v56 = vsub.f32 %v1489_v42, %v1619_v48  ;;  %125 = vmatpush.msra.mxu0 %v1593_v32  ;;  %212 = vmatpush.msra.mxu2 %v167_v50  ;;  %v168_v57 = vand.u32 4294901760, %v167_v50 }
  0x92   :  { %251 = vmatpush.msra.mxu3 %v1593_v32  ;;  %v180_v61 = vand.u32 4294901760, %v179_v51 }
  0x93   :  { %v401_v60 = vsub.f32 %v107_v52, %v1630_v55  ;;  %127 = vmatpush.msra.mxu0 %v1611_v44  ;;  %215 = vmatpush.msra.mxu2 %v173_v40  ;;  %v169_v63 = vsub.f32 %v167_v50, %v168_v57  ;;  %v414_v5 = vand.u32 4294901760, %v1633_v56 }
  0x94   :  { %253 = vmatpush.msra.mxu3 %v1611_v44  ;;  %133 = vmatmul.f32.vlgmr.msra.gmra.mxu0 %v1628_v53  ;;  %v181_v11 = vsub.f32 %v179_v51, %v180_v61 }
  0x95   :  { %v402_v0 = vand.u32 4294901760, %v401_v60  ;;  %289 = vmatpush.msrb.mxu0 %v168_v57  ;;  %218 = vmatpush.msra.mxu2 %v179_v51  ;;  %v170_v6 = vand.u32 4294901760, %v169_v63  ;;  %v415_v14 = vsub.f32 %v1633_v56, %v414_v5 }
  0x96   :  { %221 = vmatmul.f32.vlgmr.msra.gmra.mxu2 %v1589_v28  ;;  %257 = vmatmul.f32.vlgmr.msra.gmra.mxu3 %v1596_v33  ;;  %v182_v17 = vand.u32 4294901760, %v181_v11 }
  0x97   :  { %v403_v9 = vsub.f32 %v401_v60, %v402_v0  ;;  %293 = vmatpush.msrb.mxu0 %v174_v54  ;;  %357 = vmatpush.msrb.mxu2 %v1630_v55  ;;  %v416_v20 = vand.u32 4294901760, %v415_v14  ;;  %v596_v54 = vpop.permute.xlu1 %595  ;;  %v1549_v14 = vmov 43  }
  0x98   :  { %171 = vmatpush.msra.mxu1 %v170_v6  ;;  %v598_v6 = vpop.permute.xlu2 %597  ;;  %1477 = vset.pattern.permute.xlu1 %v1549_v14 }
  0x99   :  { %v404_v12 = vand.u32 4294901760, %v403_v9  ;;  %297 = vmatpush.msrb.mxu0 %v180_v61  ;;  %359 = vmatpush.msrb.mxu2 %v1602_v36 }
  0x9a   :  { %177 = vmatpush.msra.mxu1 %v176_v13  ;;  %v603_v13 = vsel %vm95_vm0, %v598_v6, 0  ;;  %1476 = vset.pattern.permute.xlu0 %v1549_v14 }
  0x9b   :  { %405 = vmatpush.msrb.mxu3 %v404_v12  ;;  %446 = vmatpush.msra.mxu0 %v401_v60 }
  0x9c   :  { %361 = vmatpush.msrb.mxu2 %v1619_v48  ;;  %183 = vmatpush.msra.mxu1 %v182_v17 }
  0x9d   :  { %411 = vmatpush.msrb.mxu3 %v410_v15  ;;  %449 = vmatpush.msra.mxu0 %v1617_v47 }
  0x9e   :  { %523 = vmatpush.msra.mxu2 %v402_v0  ;;  %141 = vmatmul.f32.gmra.mxu0 %v140_v18 }
  0x9f   :  { %417 = vmatpush.msrb.mxu3 %v416_v20  ;;  %185 = vmatmul.f32.vlgmr.msra.gmra.mxu1 %v1586_v16  ;;  %v1728_v20 = vand.u32 4294901760, %v603_v13 }
  0xa0   :  { %325 = vmatpush.msrb.mxu1 %v1609_v43  ;;  %452 = vmatpush.msra.mxu0 %v1633_v56 }
  0xa1   :  { %559 = vmatpush.msra.mxu3 %v1630_v55  ;;  %527 = vmatpush.msra.mxu2 %v408_v62  ;;  %v601_v62 = vsel %vm95_vm0, %v596_v54, 0 }
  0xa2   :  { %226 = vmatmul.f32.gmra.mxu2 %v1614_v45  ;;  %327 = vmatpush.msrb.mxu1 %v1593_v32  ;;  %v1713_v0 = vand.u32 4294901760, %v601_v62 }
  0xa3   :  { %561 = vmatpush.msra.mxu3 %v1602_v36  ;;  %531 = vmatpush.msra.mxu2 %v414_v5 }
  0xa4   :  { %263 = vmatmul.f32.gmra.mxu3 %v1637_v58  ;;  %329 = vmatpush.msrb.mxu1 %v1611_v44  ;;  %v1718_v12 = vsub.f32 %v601_v62, %v1713_v0 }
  0xa5   :  { %563 = vmatpush.msra.mxu3 %v1619_v48  ;;  %584 = vperm.xlu1 %1477, %v1576_v4  }
  0xa6   :  { %483 = vmatpush.msra.mxu1 %v1630_v55  ;;  %149 = vmatmul.f32.gmra.mxu0 %v148_v22 }
  0xa7   :  { %189 = vmatmul.f32.gmra.mxu1 %v1598_v35  ;;  %588 = vperm.xlu0 %1476, %v1571_v3  }
  0xa8   :  { %485 = vmatpush.msra.mxu1 %v1602_v36  ;;  %1475 = vset.pattern.permute.xlu2 %v1549_v14 }
  0xa9   :  { %592 = vperm.xlu2 %1475, %v1569_v2  }
  0xaa   :  { %487 = vmatpush.msra.mxu1 %v1619_v48  ;;  %231 = vmatmul.f32.gmra.mxu2 %v1653_v8 }
  0xac   :  { %269 = vmatmul.f32.gmra.mxu3 %v146_v19 }
  0xae   :  { %299 = vmatmul.f32.vlgmr.msrb.gmra.mxu0 %v1586_v16 }
  0xaf   :  { %193 = vmatmul.f32.gmra.mxu1 %v1639_v59 }
  0xb2   :  { %367 = vmatmul.f32.vlgmr.msrb.gmra.mxu2 %v1628_v53 }
  0xb4   :  { %419 = vmatmul.f32.vlgmr.msrb.gmra.mxu3 %v1586_v16 }
  0xb6   :  { %303 = vmatmul.f32.gmra.mxu0 %v1598_v35 }
  0xb7   :  { %331 = vmatmul.f32.vlgmr.msrb.gmra.mxu1 %v1586_v16 }
  0xba   :  { %375 = vmatmul.f32.gmra.mxu2 %v140_v18 }
  0xbc   :  { %423 = vmatmul.f32.gmra.mxu3 %v1598_v35 }
  0xbe   :  { %307 = vmatmul.f32.gmra.mxu0 %v1639_v59 }
  0xbf   :  { %335 = vmatmul.f32.gmra.mxu1 %v1598_v35 }
  0xc2   :  { %383 = vmatmul.f32.gmra.mxu2 %v148_v22  ;;  %v600_v22 = vpop.permute.xlu1 %599 }
  0xc4   :  { %427 = vmatmul.f32.gmra.mxu3 %v1639_v59 }
  0xc6   :  { %455 = vmatmul.f32.vlgmr.msra.gmra.mxu0 %v1589_v28 }
  0xc7   :  { %339 = vmatmul.f32.gmra.mxu1 %v1639_v59 }
  0xca   :  { %533 = vmatmul.f32.vlgmr.msra.gmra.mxu2 %v1586_v16 }
  0xcc   :  { %565 = vmatmul.f32.vlgmr.msra.gmra.mxu3 %v1586_v16 }
  0xce   :  { %460 = vmatmul.f32.gmra.mxu0 %v1614_v45 }
  0xcf   :  { %491 = vmatmul.f32.vlgmr.msra.gmra.mxu1 %v1596_v33  ;;  %v85_v33 = vpop.permute.xlu0 %84 }
  0xd2   :  { %537 = vmatmul.f32.gmra.mxu2 %v1598_v35 }
  0xd4   :  { %569 = vmatmul.f32.gmra.mxu3 %v1598_v35 }
  0xd6   :  { %465 = vmatmul.f32.gmra.mxu0 %v1653_v8 }
  0xd7   :  { %497 = vmatmul.f32.gmra.mxu1 %v1637_v58 }
  0xda   :  { %541 = vmatmul.f32.gmra.mxu2 %v1639_v59 }
  0xdc   :  { %573 = vmatmul.f32.gmra.mxu3 %v1639_v59 }
  0xdf   :  { %503 = vmatmul.f32.gmra.mxu1 %v146_v19  ;;  %v1726_v19 = vand.u32 4294901760, %v1718_v12 }
  0xe1   :  { %v635_v2 = vsub.f32 %v1718_v12, %v1726_v19 }
 0x111   :  { %v134_v23 = vpop.f32.mrf.mxu0 }
 0x112   :  { %v135_v38 = vadd.f32 %v134_v23, %v85_v33 }
 0x119   :  { %v222_v16 = vpop.f32.mrf.mxu2  ;;  %v258_v26 = vpop.f32.mrf.mxu3 }
 0x11b   :  { %v142_v24 = vpop.f32.mrf.mxu0 }
 0x11c   :  { %v186_v25 = vpop.f32.mrf.mxu1  ;;  %v143_v36 = vadd.f32 %v142_v24, %v1706_v31 }
 0x11d   :  { %v187_v40 = vadd.f32 %v186_v25, %v135_v38  ;;  %v1748_v38 = vand.u32 4294901760, %v635_v2 }
 0x11f   :  { %v223_v48 = vadd.f32 %v222_v16, %v187_v40 }
 0x121   :  { %v259_v51 = vadd.f32 %v258_v26, %v223_v48 }
 0x123   :  { %v150_v27 = vpop.f32.mrf.mxu0 }
 0x124   :  { %v190_v28 = vpop.f32.mrf.mxu1  ;;  %v151_v46 = vadd.f32 %v150_v27, %v1709_v41 }
 0x125   :  { %v227_v29 = vpop.f32.mrf.mxu2  ;;  %v191_v39 = vadd.f32 %v190_v28, %v143_v36 }
 0x127   :  { %v264_v30 = vpop.f32.mrf.mxu3  ;;  %v228_v45 = vadd.f32 %v227_v29, %v191_v39  ;;  %v1737_v29 = vsub.f32 %v603_v13, %v1728_v20 }
 0x129   :  { %v265_v49 = vadd.f32 %v264_v30, %v228_v45  ;;  %v1753_v40 = vand.u32 4294901760, %v1737_v29 }
 0x12b   :  { %v300_v32 = vpop.f32.mrf.mxu0 }
 0x12c   :  { %v194_v34 = vpop.f32.mrf.mxu1  ;;  %v301_v55 = vadd.f32 %v300_v32, %v259_v51 }
 0x12d   :  { %v232_v35 = vpop.f32.mrf.mxu2  ;;  %v195_v50 = vadd.f32 %v194_v34, %v151_v46 }
 0x12f   :  { %v270_v37 = vpop.f32.mrf.mxu3  ;;  %v233_v58 = vadd.f32 %v232_v35, %v195_v50 }
 0x131   :  { %v271_v63 = vadd.f32 %v270_v37, %v233_v58 }
 0x133   :  { %v304_v42 = vpop.f32.mrf.mxu0 }
 0x134   :  { %v332_v43 = vpop.f32.mrf.mxu1  ;;  %v305_v53 = vadd.f32 %v304_v42, %v265_v49 }
 0x135   :  { %v368_v44 = vpop.f32.mrf.mxu2  ;;  %v333_v61 = vadd.f32 %v332_v43, %v301_v55 }
 0x136   :  { %v369_v18 = vadd.f32 %v368_v44, %v85_v33  ;;  %v605_v33 = vsel %vm95_vm0, %v600_v22, 0 }
 0x137   :  { %v420_v47 = vpop.f32.mrf.mxu3  ;;  %v1750_v39 = vand.u32 4294901760, %v605_v33 }
 0x138   :  { %v421_v26 = vadd.f32 %v420_v47, %v369_v18 }
 0x13b   :  { %v308_v52 = vpop.f32.mrf.mxu0 }
 0x13c   :  { %v336_v56 = vpop.f32.mrf.mxu1  ;;  %v309_v1 = vadd.f32 %v308_v52, %v271_v63 }
 0x13d   :  { %v376_v57 = vpop.f32.mrf.mxu2  ;;  %v337_v59 = vadd.f32 %v336_v56, %v305_v53  ;;  %v1762_v53 = vsub.f32 %v605_v33, %v1750_v39 }
 0x13e   :  { %v377_v4 = vadd.f32 %v376_v57, %v1706_v31 }
 0x13f   :  { %v424_v60 = vpop.f32.mrf.mxu3  ;;  %1492 = vtanh.f32 %v337_v59  ;;  %v1772_v63 = vand.u32 4294901760, %v1762_v53 }
 0x140   :  { %1494 = vtanh.f32 %v333_v61  ;;  %v425_v34 = vadd.f32 %v424_v60, %v377_v4 }
 0x143   :  { %v456_v5 = vpop.f32.mrf.mxu0 }
 0x144   :  { %v340_v7 = vpop.f32.mrf.mxu1  ;;  %v457_v31 = vadd.f32 %v456_v5, %v421_v26 }
 0x145   :  { %v384_v8 = vpop.f32.mrf.mxu2  ;;  %v341_v9 = vadd.f32 %v340_v7, %v309_v1  ;;  %v1493_v11 = vpop.eup %1492 }
 0x146   :  { %v1495_v15 = vpop.eup %1494  ;;  %v1723_v17 = vand.u32 4294901760, %v1493_v11  ;;  %v385_v45 = vadd.f32 %v384_v8, %v1709_v41  ;;  %v643_v41 = vsub.f32 %v1737_v29, %v1753_v40 }
 0x147   :  { %v1715_v10 = vpop.f32.mrf.mxu3  ;;  %1496 = vtanh.f32 %v341_v9  ;;  %v1731_v21 = vand.u32 4294901760, %v1495_v15 }
 0x148   :  { %v677_v25 = vsub.f32 %v1493_v11, %v1723_v17  ;;  %v429_v58 = vadd.f32 %v1715_v10, %v385_v45  ;;  %v1769_v62 = vand.u32 4294901760, %v643_v41  ;;  %v651_v10 = vsub.f32 %v1762_v53, %v1772_v63 }
 0x149   :  { %v683_v32 = vsub.f32 %v1495_v15, %v1731_v21 }
 0x14a   :  { %v678_v36 = vand.u32 4294901760, %v677_v25  ;;  %v652_v15 = vand.u32 4294901760, %v651_v10 }
 0x14b   :  { %v461_v28 = vpop.f32.mrf.mxu0  ;;  %v684_v44 = vand.u32 4294901760, %v683_v32 }
 0x14c   :  { %v492_v23 = vpop.f32.mrf.mxu1  ;;  %v462_v42 = vadd.f32 %v461_v28, %v425_v34  ;;  %v679_v51 = vsub.f32 %v677_v25, %v678_v36 }
 0x14d   :  { %v534_v24 = vpop.f32.mrf.mxu2  ;;  %v1497_v16 = vpop.eup %1496  ;;  %v493_v37 = vadd.f32 %v492_v23, %v457_v31  ;;  %v685_v56 = vsub.f32 %v683_v32, %v684_v44 }
 0x14e   :  { %v608_v27 = vsel %vm102_vm1, %v1497_v16, 0  ;;  %v680_v60 = vand.u32 4294901760, %v679_v51 }
 0x14f   :  { %v566_v3 = vpop.f32.mrf.mxu3  ;;  %v1741_v30 = vand.u32 4294901760, %v608_v27  ;;  %v535_v52 = vadd.f32 %v534_v24, %v493_v37  ;;  %v686_v5 = vand.u32 4294901760, %v685_v56 }
 0x151   :  { %627 = vmatpush.msrb.mxu0 %v1741_v30  ;;  %753 = vmatpush.msrb.mxu3 %v1741_v30  ;;  %v671_v35 = vsub.f32 %v608_v27, %v1741_v30  ;;  %v567_v61 = vadd.f32 %v566_v3, %v535_v52 }
 0x153   :  { %629 = vmatpush.msrb.mxu0 %v1723_v17  ;;  %716 = vmatpush.msrb.mxu2 %v671_v35  ;;  %v672_v43 = vand.u32 4294901760, %v671_v35  ;;  %v466_v57 = vpop.f32.mrf.mxu0 }
 0x154   :  { %755 = vmatpush.msrb.mxu3 %v1723_v17  ;;  %v498_v46 = vpop.f32.mrf.mxu1  ;;  %v467_v1 = vadd.f32 %v466_v57, %v429_v58 }
 0x155   :  { %v538_v47 = vpop.f32.mrf.mxu2  ;;  %v499_v48 = vadd.f32 %v498_v46, %v462_v42  ;;  %631 = vmatpush.msrb.mxu0 %v1731_v21  ;;  %719 = vmatpush.msrb.mxu2 %v677_v25  ;;  %v673_v50 = vsub.f32 %v671_v35, %v672_v43  ;;  %v1813_v42 = vpop.permute.xlu1 %584 }
 0x156   :  { %757 = vmatpush.msrb.mxu3 %v1731_v21  ;;  %637 = vmatmul.f32.vlgmr.msrb.gmra.mxu0 %v1748_v38 }
 0x157   :  { %v570_v49 = vpop.f32.mrf.mxu3  ;;  %v539_v54 = vadd.f32 %v538_v47, %v499_v48  ;;  %793 = vmatpush.msra.mxu0 %v672_v43  ;;  %722 = vmatpush.msrb.mxu2 %v683_v32  ;;  %v674_v55 = vand.u32 4294901760, %v673_v50  ;;  %v1817_v48 = vpop.permute.xlu2 %592 }
 0x158   :  { %725 = vmatmul.f32.vlgmr.msrb.gmra.mxu2 %v1718_v12  ;;  %761 = vmatmul.f32.vlgmr.msrb.gmra.mxu3 %v1726_v19 }
 0x159   :  { %v571_v59 = vadd.f32 %v570_v49, %v539_v54  ;;  %797 = vmatpush.msra.mxu0 %v678_v36  ;;  %675 = vmatpush.msrb.mxu1 %v674_v55 }
 0x15b   :  { %801 = vmatpush.msra.mxu0 %v684_v44  ;;  %681 = vmatpush.msrb.mxu1 %v680_v60  ;;  %1498 = vtanh.f32 %v571_v59 }
 0x15c   :  { %v504_v6 = vpop.f32.mrf.mxu1  ;;  %1500 = vtanh.f32 %v567_v61 }
 0x15d   :  { %v542_v7 = vpop.f32.mrf.mxu2  ;;  %v505_v8 = vadd.f32 %v504_v6, %v467_v1  ;;  %687 = vmatpush.msrb.mxu1 %v686_v5 }
 0x15e   :  { %645 = vmatmul.f32.gmra.mxu0 %v1769_v62  ;;  %689 = vmatmul.f32.vlgmr.msrb.gmra.mxu1 %v1713_v0 }
 0x15f   :  { %v574_v9 = vpop.f32.mrf.mxu3  ;;  %v543_v11 = vadd.f32 %v542_v7, %v505_v8  ;;  %829 = vmatpush.msra.mxu1 %v1741_v30 }
 0x160   :  { %730 = vmatmul.f32.gmra.mxu2 %v1737_v29  ;;  %767 = vmatmul.f32.gmra.mxu3 %v1753_v40 }
 0x161   :  { %v575_v13 = vadd.f32 %v574_v9, %v543_v11  ;;  %831 = vmatpush.msra.mxu1 %v1723_v17  ;;  %v1499_v14 = vpop.eup %1498 }
 0x162   :  { %v1501_v18 = vpop.eup %1500  ;;  %v862_v22 = vand.u32 4294901760, %v1499_v14 }
 0x163   :  { %1502 = vtanh.f32 %v575_v13  ;;  %833 = vmatpush.msra.mxu1 %v1731_v21  ;;  %v864_v23 = vand.u32 4294901760, %v1501_v18 }
 0x164   :  { %v911_v16 = vsub.f32 %v1499_v14, %v862_v22 }
 0x165   :  { %v917_v3 = vsub.f32 %v1501_v18, %v864_v23 }
 0x166   :  { %653 = vmatmul.f32.gmra.mxu0 %v652_v15  ;;  %693 = vmatmul.f32.gmra.mxu1 %v1728_v20  ;;  %v912_v21 = vand.u32 4294901760, %v911_v16 }
 0x167   :  { %v918_v27 = vand.u32 4294901760, %v917_v3 }
 0x168   :  { %735 = vmatmul.f32.gmra.mxu2 %v1762_v53  ;;  %773 = vmatmul.f32.gmra.mxu3 %v1772_v63  ;;  %v913_v2 = vsub.f32 %v911_v16, %v912_v21 }
 0x169   :  { %v1503_v24 = vpop.eup %1502  ;;  %v919_v32 = vsub.f32 %v917_v3, %v918_v27 }
 0x16a   :  { %v611_v4 = vsel %vm102_vm1, %v1503_v24, 0  ;;  %v914_v33 = vand.u32 4294901760, %v913_v2 }
 0x16b   :  { %v860_v17 = vand.u32 4294901760, %v611_v4  ;;  %v920_v31 = vand.u32 4294901760, %v919_v32 }
 0x16d   :  { %861 = vmatpush.msra.mxu2 %v860_v17  ;;  %987 = vmatpush.msrb.mxu1 %v860_v17  ;;  %v905_v25 = vsub.f32 %v611_v4, %v860_v17 }
 0x16e   :  { %697 = vmatmul.f32.gmra.mxu1 %v1750_v39  ;;  %803 = vmatmul.f32.vlgmr.msra.gmra.mxu0 %v1713_v0 }
 0x16f   :  { %863 = vmatpush.msra.mxu2 %v862_v22  ;;  %950 = vmatpush.msrb.mxu0 %v905_v25  ;;  %v906_v26 = vand.u32 4294901760, %v905_v25 }
 0x170   :  { %989 = vmatpush.msrb.mxu1 %v862_v22 }
 0x171   :  { %865 = vmatpush.msra.mxu2 %v864_v23  ;;  %953 = vmatpush.msrb.mxu0 %v911_v16  ;;  %v907_v28 = vsub.f32 %v905_v25, %v906_v26 }
 0x172   :  { %991 = vmatpush.msrb.mxu1 %v864_v23  ;;  %871 = vmatmul.f32.vlgmr.msra.gmra.mxu2 %v1748_v38  ;;  %v1811_v38 = vpop.permute.xlu0 %588 }
 0x173   :  { %1027 = vmatpush.msrb.mxu2 %v906_v26  ;;  %956 = vmatpush.msrb.mxu0 %v917_v3  ;;  %v908_v30 = vand.u32 4294901760, %v907_v28 }
 0x175   :  { %1031 = vmatpush.msrb.mxu2 %v912_v21  ;;  %909 = vmatpush.msra.mxu3 %v908_v30 }
 0x176   :  { %807 = vmatmul.f32.gmra.mxu0 %v1728_v20  ;;  %835 = vmatmul.f32.vlgmr.msra.gmra.mxu1 %v1713_v0 }
 0x177   :  { %1035 = vmatpush.msrb.mxu2 %v918_v27  ;;  %915 = vmatpush.msra.mxu3 %v914_v33 }
 0x179   :  { %921 = vmatpush.msra.mxu3 %v920_v31 }
 0x17a   :  { %879 = vmatmul.f32.gmra.mxu2 %v1769_v62  ;;  %923 = vmatmul.f32.vlgmr.msra.gmra.mxu3 %v1713_v0 }
 0x17b   :  { %1063 = vmatpush.msrb.mxu3 %v860_v17 }
 0x17d   :  { %1065 = vmatpush.msrb.mxu3 %v862_v22 }
 0x17e   :  { %811 = vmatmul.f32.gmra.mxu0 %v1750_v39  ;;  %839 = vmatmul.f32.gmra.mxu1 %v1728_v20 }
 0x17f   :  { %1067 = vmatpush.msrb.mxu3 %v864_v23  ;;  %v31_v23 = vld [vmem:[#allocation2 + $0x14] sm:$0x1] }
 0x180   :  { %v1093_v16 = vsel %vm95_vm0, %v31_v23, 0 }
 0x181   :  { %v1825_v17 = vand.u32 4294901760, %v1093_v16 }
 0x182   :  { %887 = vmatmul.f32.gmra.mxu2 %v652_v15  ;;  %927 = vmatmul.f32.gmra.mxu3 %v1728_v20 }
 0x183   :  { %v1830_v28 = vsub.f32 %v1093_v16, %v1825_v17 }
 0x185   :  { %v1834_v32 = vand.u32 4294901760, %v1830_v28 }
 0x186   :  { %843 = vmatmul.f32.gmra.mxu1 %v1750_v39  ;;  %959 = vmatmul.f32.vlgmr.msrb.gmra.mxu0 %v1718_v12 }
 0x18a   :  { %931 = vmatmul.f32.gmra.mxu3 %v1750_v39  ;;  %1037 = vmatmul.f32.vlgmr.msrb.gmra.mxu2 %v1713_v0 }
 0x18e   :  { %964 = vmatmul.f32.gmra.mxu0 %v1737_v29  ;;  %995 = vmatmul.f32.vlgmr.msrb.gmra.mxu1 %v1726_v19 }
 0x192   :  { %1041 = vmatmul.f32.gmra.mxu2 %v1728_v20  ;;  %1069 = vmatmul.f32.vlgmr.msrb.gmra.mxu3 %v1713_v0 }
 0x196   :  { %969 = vmatmul.f32.gmra.mxu0 %v1762_v53  ;;  %1001 = vmatmul.f32.gmra.mxu1 %v1753_v40 }
 0x19a   :  { %1045 = vmatmul.f32.gmra.mxu2 %v1750_v39  ;;  %1073 = vmatmul.f32.gmra.mxu3 %v1728_v20 }
 0x19e   :  { %1007 = vmatmul.f32.gmra.mxu1 %v1772_v63 }
 0x1a2   :  { %1077 = vmatmul.f32.gmra.mxu3 %v1750_v39 }
 0x1d3   :  { %v638_v12 = vpop.f32.mrf.mxu0 }
 0x1d4   :  { %v639_v39 = vadd.f32 %v638_v12, %v1813_v42 }
 0x1db   :  { %v646_v29 = vpop.f32.mrf.mxu0  ;;  %v690_v34 = vpop.f32.mrf.mxu1 }
 0x1dc   :  { %v726_v19 = vpop.f32.mrf.mxu2  ;;  %v762_v35 = vpop.f32.mrf.mxu3  ;;  %v647_v20 = vadd.f32 %v646_v29, %v1811_v38  ;;  %v691_v47 = vadd.f32 %v690_v34, %v639_v39  ;;  %v1123_v29 = vsub.f32 %v1830_v28, %v1834_v32 }
 0x1de   :  { %v727_v53 = vadd.f32 %v726_v19, %v691_v47 }
 0x1e0   :  { %v763_v57 = vadd.f32 %v762_v35, %v727_v53 }
 0x1e3   :  { %v654_v36 = vpop.f32.mrf.mxu0  ;;  %v694_v37 = vpop.f32.mrf.mxu1 }
 0x1e4   :  { %v731_v0 = vpop.f32.mrf.mxu2  ;;  %v768_v40 = vpop.f32.mrf.mxu3  ;;  %v695_v46 = vadd.f32 %v694_v37, %v647_v20  ;;  %v655_v52 = vadd.f32 %v654_v36, %v1817_v48 }
 0x1e6   :  { %v732_v51 = vadd.f32 %v731_v0, %v695_v46  ;;  %v1842_v0 = vand.u32 4294901760, %v1123_v29 }
 0x1e8   :  { %v769_v55 = vadd.f32 %v768_v40, %v732_v51 }
 0x1eb   :  { %v698_v43 = vpop.f32.mrf.mxu1  ;;  %v804_v44 = vpop.f32.mrf.mxu0 }
 0x1ec   :  { %v736_v45 = vpop.f32.mrf.mxu2  ;;  %v774_v41 = vpop.f32.mrf.mxu3  ;;  %v699_v56 = vadd.f32 %v698_v43, %v655_v52  ;;  %v805_v59 = vadd.f32 %v804_v44, %v763_v57 }
 0x1ee   :  { %v737_v61 = vadd.f32 %v736_v45, %v699_v56 }
 0x1f0   :  { %v775_v7 = vadd.f32 %v774_v41, %v737_v61 }
 0x1f3   :  { %v808_v49 = vpop.f32.mrf.mxu0  ;;  %v836_v50 = vpop.f32.mrf.mxu1 }
 0x1f4   :  { %v809_v58 = vadd.f32 %v808_v49, %v769_v55  ;;  %v837_v1 = vadd.f32 %v836_v50, %v805_v59 }
 0x1f5   :  { %v872_v54 = vpop.f32.mrf.mxu2 }
 0x1f6   :  { %v873_v36 = vadd.f32 %v872_v54, %v1813_v42 }
 0x1fb   :  { %v840_v60 = vpop.f32.mrf.mxu1  ;;  %v812_v62 = vpop.f32.mrf.mxu0 }
 0x1fc   :  { %v841_v63 = vadd.f32 %v840_v60, %v809_v58  ;;  %v813_v8 = vadd.f32 %v812_v62, %v775_v7  ;;  %v32_v7 = vld [vmem:[#allocation2 + $0x15] sm:$0x1] }
 0x1fd   :  { %v880_v5 = vpop.f32.mrf.mxu2  ;;  %v924_v6 = vpop.f32.mrf.mxu3 }
 0x1fe   :  { %1504 = vtanh.f32 %v841_v63  ;;  %v881_v34 = vadd.f32 %v880_v5, %v1811_v38  ;;  %v925_v20 = vadd.f32 %v924_v6, %v873_v36 }
 0x1ff   :  { %1506 = vtanh.f32 %v837_v1 }
 0x203   :  { %v844_v9 = vpop.f32.mrf.mxu1  ;;  %v960_v18 = vpop.f32.mrf.mxu0 }
 0x204   :  { %v845_v10 = vadd.f32 %v844_v9, %v813_v8  ;;  %v1505_v11 = vpop.eup %1504  ;;  %v961_v46 = vadd.f32 %v960_v18, %v925_v20  ;;  %v1550_v9 = vmov 0  }
 0x205   :  { %v888_v13 = vpop.f32.mrf.mxu2  ;;  %v928_v14 = vpop.f32.mrf.mxu3  ;;  %v1820_v22 = vand.u32 4294901760, %v1505_v11  ;;  %1478 = vset.pattern.permute.xlu2 %v1550_v9  ;;  %1479 = vset.pattern.permute.xlu0 %v1550_v9 }
 0x206   :  { %1508 = vtanh.f32 %v845_v10  ;;  %v1507_v15 = vpop.eup %1506  ;;  %v929_v40 = vadd.f32 %v928_v14, %v881_v34  ;;  %v889_v52 = vadd.f32 %v888_v13, %v1817_v48  ;;  %1089 = vperm.xlu2 %1478, %v32_v7  }
 0x207   :  { %v1822_v24 = vand.u32 4294901760, %v1507_v15  ;;  %v1149_v25 = vsub.f32 %v1505_v11, %v1820_v22 }
 0x209   :  { %v1155_v30 = vsub.f32 %v1507_v15, %v1822_v24  ;;  %v1150_v31 = vand.u32 4294901760, %v1149_v25 }
 0x20b   :  { %v996_v4 = vpop.f32.mrf.mxu1  ;;  %v965_v12 = vpop.f32.mrf.mxu0  ;;  %v1156_v35 = vand.u32 4294901760, %v1155_v30  ;;  %v1151_v44 = vsub.f32 %v1149_v25, %v1150_v31 }
 0x20c   :  { %v1509_v3 = vpop.eup %1508  ;;  %v966_v45 = vadd.f32 %v965_v12, %v929_v40  ;;  %v997_v51 = vadd.f32 %v996_v4, %v961_v46 }
 0x20d   :  { %v1096_v21 = vsel %vm102_vm1, %v1509_v3, 0  ;;  %v932_v26 = vpop.f32.mrf.mxu3  ;;  %v1038_v27 = vpop.f32.mrf.mxu2  ;;  %v1157_v42 = vsub.f32 %v1155_v30, %v1156_v35  ;;  %v1152_v50 = vand.u32 4294901760, %v1151_v44 }
 0x20e   :  { %v1114_v2 = vand.u32 4294901760, %v1096_v21  ;;  %v933_v54 = vadd.f32 %v932_v26, %v889_v52  ;;  %v1039_v56 = vadd.f32 %v1038_v27, %v997_v51 }
 0x20f   :  { %v1158_v53 = vand.u32 4294901760, %v1157_v42 }
 0x210   :  { %1115 = vmatpush.msra.mxu0 %v1114_v2  ;;  %1207 = vmatpush.msra.mxu3 %v1114_v2  ;;  %v1143_v33 = vsub.f32 %v1096_v21, %v1114_v2 }
 0x212   :  { %1117 = vmatpush.msra.mxu0 %v1820_v22  ;;  %1180 = vmatpush.msra.mxu2 %v1143_v33  ;;  %v1144_v19 = vand.u32 4294901760, %v1143_v33 }
 0x213   :  { %1209 = vmatpush.msra.mxu3 %v1820_v22  ;;  %v1002_v37 = vpop.f32.mrf.mxu1  ;;  %v970_v41 = vpop.f32.mrf.mxu0 }
 0x214   :  { %1119 = vmatpush.msra.mxu0 %v1822_v24  ;;  %1183 = vmatpush.msra.mxu2 %v1149_v25  ;;  %v1145_v43 = vsub.f32 %v1143_v33, %v1144_v19  ;;  %v1003_v49 = vadd.f32 %v1002_v37, %v966_v45  ;;  %v971_v59 = vadd.f32 %v970_v41, %v933_v54 }
 0x215   :  { %1211 = vmatpush.msra.mxu3 %v1822_v24  ;;  %v1070_v38 = vpop.f32.mrf.mxu3  ;;  %1125 = vmatmul.f32.vlgmr.msra.gmra.mxu0 %v1842_v0  ;;  %v1042_v47 = vpop.f32.mrf.mxu2 }
 0x216   :  { %1235 = vmatpush.msrb.mxu0 %v1144_v19  ;;  %1186 = vmatpush.msra.mxu2 %v1155_v30  ;;  %v1146_v39 = vand.u32 4294901760, %v1145_v43  ;;  %v1043_v55 = vadd.f32 %v1042_v47, %v1003_v49  ;;  %v1071_v61 = vadd.f32 %v1070_v38, %v1039_v56 }
 0x217   :  { %1189 = vmatmul.f32.vlgmr.msra.gmra.mxu2 %v1830_v28  ;;  %1215 = vmatmul.f32.vlgmr.msra.gmra.mxu3 %v1834_v32 }
 0x218   :  { %1239 = vmatpush.msrb.mxu0 %v1150_v31  ;;  %1147 = vmatpush.msra.mxu1 %v1146_v39 }
 0x21a   :  { %1243 = vmatpush.msrb.mxu0 %v1156_v35  ;;  %1153 = vmatpush.msra.mxu1 %v1152_v50 }
 0x21b   :  { %v1008_v57 = vpop.f32.mrf.mxu1 }
 0x21c   :  { %1159 = vmatpush.msra.mxu1 %v1158_v53  ;;  %v1009_v48 = vadd.f32 %v1008_v57, %v971_v59 }
 0x21d   :  { %v1074_v58 = vpop.f32.mrf.mxu3  ;;  %1161 = vmatmul.f32.vlgmr.msra.gmra.mxu1 %v1825_v17  ;;  %1245 = vmatmul.f32.vlgmr.msrb.gmra.mxu0 %v1825_v17  ;;  %v1046_v62 = vpop.f32.mrf.mxu2 }
 0x21e   :  { %1263 = vmatpush.msrb.mxu1 %v1114_v2  ;;  %v1075_v60 = vadd.f32 %v1074_v58, %v1043_v55  ;;  %v1047_v63 = vadd.f32 %v1046_v62, %v1009_v48 }
 0x220   :  { %1265 = vmatpush.msrb.mxu1 %v1820_v22  ;;  %1510 = vtanh.f32 %v1075_v60 }
 0x221   :  { %1512 = vtanh.f32 %v1071_v61 }
 0x222   :  { %1267 = vmatpush.msrb.mxu1 %v1822_v24 }
 0x225   :  { %v1078_v1 = vpop.f32.mrf.mxu3  ;;  %1269 = vmatmul.f32.vlgmr.msrb.gmra.mxu1 %v1825_v17 }
 0x226   :  { %v1079_v5 = vadd.f32 %v1078_v1, %v1047_v63  ;;  %v1511_v6 = vpop.eup %1510 }
 0x227   :  { %v1513_v8 = vpop.eup %1512  ;;  %v1288_v10 = vand.u32 4294901760, %v1511_v6 }
 0x228   :  { %1514 = vtanh.f32 %v1079_v5  ;;  %v1290_v11 = vand.u32 4294901760, %v1513_v8 }
 0x229   :  { %v1321_v14 = vsub.f32 %v1511_v6, %v1288_v10 }
 0x22a   :  { %v1327_v22 = vsub.f32 %v1513_v8, %v1290_v11 }
 0x22b   :  { %v1322_v24 = vand.u32 4294901760, %v1321_v14 }
 0x22c   :  { %v1328_v4 = vand.u32 4294901760, %v1327_v22 }
 0x22d   :  { %v1323_v25 = vsub.f32 %v1321_v14, %v1322_v24 }
 0x22e   :  { %v1515_v13 = vpop.eup %1514  ;;  %v1329_v26 = vsub.f32 %v1327_v22, %v1328_v4 }
 0x22f   :  { %v1099_v15 = vsel %vm102_vm1, %v1515_v13, 0  ;;  %v1324_v27 = vand.u32 4294901760, %v1323_v25 }
 0x230   :  { %v1286_v18 = vand.u32 4294901760, %v1099_v15  ;;  %v1330_v2 = vand.u32 4294901760, %v1329_v26 }
 0x232   :  { %1287 = vmatpush.msrb.mxu2 %v1286_v18  ;;  %1379 = vmatpush.msra.mxu1 %v1286_v18  ;;  %v1315_v23 = vsub.f32 %v1099_v15, %v1286_v18 }
 0x234   :  { %1289 = vmatpush.msrb.mxu2 %v1288_v10  ;;  %1352 = vmatpush.msra.mxu0 %v1315_v23  ;;  %v1316_v16 = vand.u32 4294901760, %v1315_v23 }
 0x235   :  { %1381 = vmatpush.msra.mxu1 %v1288_v10 }
 0x236   :  { %1291 = vmatpush.msrb.mxu2 %v1290_v11  ;;  %1355 = vmatpush.msra.mxu0 %v1321_v14  ;;  %v1317_v3 = vsub.f32 %v1315_v23, %v1316_v16 }
 0x237   :  { %1383 = vmatpush.msra.mxu1 %v1290_v11  ;;  %1297 = vmatmul.f32.vlgmr.msrb.gmra.mxu2 %v1842_v0 }
 0x238   :  { %1407 = vmatpush.msra.mxu2 %v1316_v16  ;;  %1358 = vmatpush.msra.mxu0 %v1327_v22  ;;  %v1318_v21 = vand.u32 4294901760, %v1317_v3 }
 0x239   :  { %1361 = vmatmul.f32.vlgmr.msra.gmra.mxu0 %v1830_v28  ;;  %1387 = vmatmul.f32.vlgmr.msra.gmra.mxu1 %v1834_v32 }
 0x23a   :  { %1411 = vmatpush.msra.mxu2 %v1322_v24  ;;  %1319 = vmatpush.msrb.mxu3 %v1318_v21 }
 0x23c   :  { %1415 = vmatpush.msra.mxu2 %v1328_v4  ;;  %1325 = vmatpush.msrb.mxu3 %v1324_v27 }
 0x23e   :  { %1331 = vmatpush.msrb.mxu3 %v1330_v2 }
 0x23f   :  { %1333 = vmatmul.f32.vlgmr.msrb.gmra.mxu3 %v1825_v17  ;;  %1417 = vmatmul.f32.vlgmr.msra.gmra.mxu2 %v1825_v17 }
 0x240   :  { %1435 = vmatpush.msra.mxu3 %v1286_v18 }
 0x242   :  { %1437 = vmatpush.msra.mxu3 %v1288_v10 }
 0x244   :  { %1439 = vmatpush.msra.mxu3 %v1290_v11 }
 0x247   :  { %1441 = vmatmul.f32.vlgmr.msra.gmra.mxu3 %v1825_v17 }
 0x260   :  { %v1090_v31 = vpop.permute.xlu2 %1089 }
 0x292   :  { %v1126_v30 = vpop.f32.mrf.mxu0 }
 0x293   :  { %v1127_v12 = vadd.f32 %v1126_v30, %v1090_v31 }
 0x29a   :  { %v1162_v33 = vpop.f32.mrf.mxu1  ;;  %v1190_v28 = vpop.f32.mrf.mxu2 }
 0x29b   :  { %v1216_v29 = vpop.f32.mrf.mxu3  ;;  %v1246_v32 = vpop.f32.mrf.mxu0  ;;  %v1163_v19 = vadd.f32 %v1162_v33, %v1127_v12 }
 0x29d   :  { %v1191_v36 = vadd.f32 %v1190_v28, %v1163_v19 }
 0x29f   :  { %v1217_v43 = vadd.f32 %v1216_v29, %v1191_v36 }
 0x2a1   :  { %v1247_v17 = vadd.f32 %v1246_v32, %v1217_v43 }
 0x2a2   :  { %v1270_v34 = vpop.f32.mrf.mxu1 }
 0x2a3   :  { %v1271_v47 = vadd.f32 %v1270_v34, %v1247_v17 }
 0x2a5   :  { %v1445_v51 = vperm.slane %v1271_v47, 0 }
 0x2b6   :  { %v1362_v40 = vpop.f32.mrf.mxu0  ;;  %v1388_v20 = vpop.f32.mrf.mxu1 }
 0x2ba   :  { %v1298_v35 = vpop.f32.mrf.mxu2 }
 0x2bb   :  { %v1299_v37 = vadd.f32 %v1298_v35, %v1090_v31 }
 0x2c2   :  { %v1334_v0 = vpop.f32.mrf.mxu3  ;;  %v1418_v45 = vpop.f32.mrf.mxu2 }
 0x2c3   :  { %v1335_v44 = vadd.f32 %v1334_v0, %v1299_v37 }
 0x2c5   :  { %v1363_v38 = vadd.f32 %v1362_v40, %v1335_v44 }
 0x2c7   :  { %v1389_v39 = vadd.f32 %v1388_v20, %v1363_v38 }
 0x2c9   :  { %v1419_v42 = vadd.f32 %v1418_v45, %v1389_v39 }
 0x2ca   :  { %v1442_v46 = vpop.f32.mrf.mxu3 }
 0x2cb   :  { %v1443_v49 = vadd.f32 %v1442_v46, %v1419_v42 }
 0x2cd   :  { %v1446_v50 = vperm.slane %v1443_v49, 0 }
 0x2cf   :  { %v1449_v52 = vrot.slane %v1446_v50, 6 }
 0x2d1   :  { %v1451_v53 = vsel %vm1450_vm2, %v1445_v51, %v1449_v52 }
 0x2d2   :  { %1453 = vst [vmem:[%s1867_s2] sm:$0xf] %v1451_v53 }
 0x2d3   :  { %1458 = vsyncpa [#allocation3], 1 }

</bundles_post_ra>
